<compile_context>
chip_gen: v6e
topology: v6e:2x2x1
jax: 0.10.0
libtpu: 0.0.40
codegen_flags: <defaults>
</compile_context>

<pallas_src>
import jax
import jax.numpy as jnp
from jax.experimental import pallas as pl
from jax.experimental.pallas import tpu as pltpu


def _round_up(n, m):
    return ((n + m - 1) // m) * m


def _use_bf16_transcendentals():
    """bf16 EUP is available on v6e/v7x; v5e (and older) must keep f32 transcendentals."""
    try:
        kind = jax.devices()[0].device_kind.lower()
    except Exception:
        return False
    return ("v6" in kind) or ("v7" in kind)


def _make_sog_kernel(use_bf16_eup):
    def sog_block1d_kernel(x_ref, w0_ref, b0_ref, w1_ref, b1_ref,
                           w2_ref, b2_ref, wout_ref, bout_ref, o_ref):
        # x_ref: (TM, R) tile of the batch; w0/w1/w2 bf16, wout (scale-folded) f32, biases f32.
        x = x_ref[...].astype(jnp.float32)

        # x = torch.square(x)
        h = jnp.square(x)

        # x = tanh(fc0(x))        fc0: R -> 128   (bf16 MXU operands, f32 accumulate)
        h = jnp.dot(h.astype(jnp.bfloat16), w0_ref[...],
                    preferred_element_type=jnp.float32) + b0_ref[...]
        if use_bf16_eup:
            h = jnp.tanh(h.astype(jnp.bfloat16))        # bf16 EUP (v6e/v7x), feeds next dot
        else:
            h = jnp.tanh(h).astype(jnp.bfloat16)        # f32 EUP (v5e-safe)

        # x = tanh(fc1(x))        fc1: 128 -> 256
        h = jnp.dot(h, w1_ref[...],
                    preferred_element_type=jnp.float32) + b1_ref[...]
        if use_bf16_eup:
            h = jnp.tanh(h.astype(jnp.bfloat16))
        else:
            h = jnp.tanh(h).astype(jnp.bfloat16)

        # x = fc2(x)              fc2: 256 -> 256
        h = jnp.dot(h, w2_ref[...],
                    preferred_element_type=jnp.float32) + b2_ref[...]

        # x = exp(x) * scale ; x = fc_out(x) -- scale pre-folded into wout in the wrapper.
        # exp + fc_out stay f32: exp spans orders of magnitude and this matmul is ~4% of the MACs.
        h = jnp.exp(h)
        y = jnp.dot(h, wout_ref[...],
                    preferred_element_type=jnp.float32) + bout_ref[...]

        o_ref[...] = y.astype(o_ref.dtype)

    return sog_block1d_kernel


def sog_block1d_forward(x, params, *, tm=2048):
    """x: (B, C, R) with C == 1.  Returns (B, 1, R), matching the PyTorch module."""
    B, C, R = x.shape
    assert C == 1, "SOG_block1d.view(B, R) requires C == 1"
    x2d = x.reshape(B, R).astype(jnp.float32)

    w0, b0, w1, b1, w2, b2, scale, wout, bout = params

    # Fold scale into fc_out:  (exp(h) * s) @ W == exp(h) @ (diag(s) @ W)   -- exact rewrite.
    # Kept in f32 (the final dot stays f32 for precision of the exp-scaled activations).
    wout_scaled = (wout * scale.reshape(-1, 1)).astype(jnp.float32)

    # bf16 weights for the MXU on the big matmuls (halves weight DMA / residency); biases f32.
    w0_b = w0.astype(jnp.bfloat16)
    w1_b = w1.astype(jnp.bfloat16)
    w2_b = w2.astype(jnp.bfloat16)

    # Batch tiling:
    #   * large TM (default 2048) amortizes the ~0.35us per-grid-step fixed overhead,
    #   * capped so the grid keeps >= 2 steps (megacore sharding on v7x's 2 TensorCores),
    #   * TM is a multiple of 8 (sublane); B padded up to a multiple of TM (zero rows are
    #     computed through the network and sliced off -- harmless, exp(bias) stays finite).
    tm_cap = _round_up(max(pl.cdiv(B, 2), 8), 8)
    TM = max(8, min(tm, tm_cap))
    B_pad = _round_up(B, TM)
    if B_pad != B:
        x2d = jnp.pad(x2d, ((0, B_pad - B), (0, 0)))

    grid = (B_pad // TM,)

    row_spec = pl.BlockSpec((TM, R), lambda i: (i, 0))                 # streamed x / out tiles
    resident = lambda a: pl.BlockSpec(a.shape, lambda i: (0, 0))       # weights: fetched once

    # Advisory cost hint so XLA schedules this compute-dense call sensibly in larger graphs.
    macs_per_row = R * 128 + 128 * 256 + 256 * 256 + 256 * R
    weight_bytes = 2 * (R * 128 + 128 * 256 + 256 * 256) + 4 * (256 * R) \
                   + 4 * (128 + 256 + 256 + R)
    cost = pl.CostEstimate(
        flops=2 * B_pad * macs_per_row,
        transcendentals=B_pad * (128 + 256 + 256),
        bytes_accessed=2 * B_pad * R * 4 + weight_bytes,
    )

    kernel = _make_sog_kernel(_use_bf16_transcendentals())

    out = pl.pallas_call(
        kernel,
        out_shape=jax.ShapeDtypeStruct((B_pad, R), jnp.float32),
        grid=grid,
        in_specs=[
            row_spec,                 # x tile         (TM, R)
            resident(w0_b),           # fc0 weight     (R, 128)   bf16
            resident(b0),             # fc0 bias       (1, 128)   f32
            resident(w1_b),           # fc1 weight     (128, 256) bf16
            resident(b1),             # fc1 bias       (1, 256)   f32
            resident(w2_b),           # fc2 weight     (256, 256) bf16
            resident(b2),             # fc2 bias       (1, 256)   f32
            resident(wout_scaled),    # fc_out weight  (256, R)   f32, scale folded in
            resident(bout),           # fc_out bias    (1, R)     f32
        ],
        out_specs=row_spec,
        compiler_params=pltpu.CompilerParams(
            dimension_semantics=("parallel",),          # megacore sharding of the batch axis
            vmem_limit_bytes=32 * 1024 * 1024,          # TM=2048 tiles fit easily; v7x-safe
        ),
        cost_estimate=cost,
    )(x2d, w0_b, b0, w1_b, b1, w2_b, b2, wout_scaled, bout)

    if B_pad != B:
        out = out[:B]
    return out.reshape(B, 1, R)


def init_params(key, res):
    """Deterministic synthetic parameters matching nn.Linear shapes.

    PyTorch stores Linear weights as (out, in); we pre-transpose to (in, out)
    so the kernel can do x @ W directly.  Biases / scale are 2-D (1, N).
    """
    ks = jax.random.split(key, 9)

    def uniform(k, shape, fan_in):
        bound = 1.0 / jnp.sqrt(jnp.float32(fan_in))
        return jax.random.uniform(k, shape, jnp.float32, -bound, bound)

    w0 = uniform(ks[0], (res, 128), res)       # fc0: res -> 128
    b0 = uniform(ks[1], (1, 128), res)
    w1 = uniform(ks[2], (128, 256), 128)       # fc1: 128 -> 256
    b1 = uniform(ks[3], (1, 256), 128)
    w2 = uniform(ks[4], (256, 256), 256)       # fc2: 256 -> 256
    b2 = uniform(ks[5], (1, 256), 256)
    scale = jax.random.uniform(ks[6], (1, 256), jnp.float32)  # torch.rand(256)
    wout = uniform(ks[7], (256, res), 256)     # fc_out: 256 -> res
    bout = uniform(ks[8], (1, res), 256)
    return (w0, b0, w1, b1, w2, b2, scale, wout, bout)


def reference_forward(x, params):
    """Plain-JAX f32 reference mirroring the PyTorch forward (scale applied explicitly)."""
    w0, b0, w1, b1, w2, b2, scale, wout, bout = params
    B, C, R = x.shape
    h = jnp.square(x).reshape(B, R)
    h = jnp.tanh(h @ w0 + b0)
    h = jnp.tanh(h @ w1 + b1)
    h = h @ w2 + b2
    h = jnp.exp(h) * scale
    h = h @ wout + bout
    return h.reshape(B, 1, R)


if __name__ == "__main__":
    key = jax.random.PRNGKey(0)
    k_x, k_p = jax.random.split(key)

    B, C, RES = 40, 1, 16
    x = jax.random.normal(k_x, (B, C, RES), dtype=jnp.float32)
    params = init_params(k_p, RES)

    # Default tm: at this small demo B the >=2-step cap gives TM=24, grid=(2,), with 8 padded
    # rows -- exercising the streamed pipeline, padding, and megacore-friendly grid shape.
    # Production callers with large B get TM up to 2048.
    y = sog_block1d_forward(x, params)
    y = jax.block_until_ready(y)

    y_ref = reference_forward(x, params)
    assert y.shape == (B, 1, RES)
    # bf16 MXU operands / bf16 tanh on v6e+ => ~1e-2-level relative error vs the f32 reference
    # (exp + fc_out kept in f32 to bound the error on the precision-sensitive final stage).
    assert jnp.allclose(y, y_ref, atol=5e-2, rtol=5e-2), "mismatch vs JAX reference"

    print("KERNEL_OK")
</pallas_src>

<mosaic_0001>
module attributes {stable_mosaic.version = 11 : i64} {
  func.func @sog_block1d_kernel(%arg0: i32, %arg1: memref<24x16xf32, #tpu.memory_space<vmem>>, %arg2: memref<16x128xbf16, #tpu.memory_space<vmem>>, %arg3: memref<1x128xf32, #tpu.memory_space<vmem>>, %arg4: memref<128x256xbf16, #tpu.memory_space<vmem>>, %arg5: memref<1x256xf32, #tpu.memory_space<vmem>>, %arg6: memref<256x256xbf16, #tpu.memory_space<vmem>>, %arg7: memref<1x256xf32, #tpu.memory_space<vmem>>, %arg8: memref<256x16xf32, #tpu.memory_space<vmem>>, %arg9: memref<1x16xf32, #tpu.memory_space<vmem>>, %arg10: memref<24x16xf32, #tpu.memory_space<vmem>>) attributes {dimension_semantics = [#tpu.dimension_semantics<parallel>], iteration_bounds = array<i64: 2>, scalar_prefetch = 0 : i64, scratch_operands = 0 : i64, tpu.core_type = #tpu.core_type<tc>, window_params = [{transform_indices = @transform_0, window_bounds = array<i64: 24, 16>}, {pipeline_mode = #tpu.pipeline_mode<synchronous>, transform_indices = @transform_1, window_bounds = array<i64: 16, 128>}, {pipeline_mode = #tpu.pipeline_mode<synchronous>, transform_indices = @transform_2, window_bounds = array<i64: 1, 128>}, {pipeline_mode = #tpu.pipeline_mode<synchronous>, transform_indices = @transform_3, window_bounds = array<i64: 128, 256>}, {pipeline_mode = #tpu.pipeline_mode<synchronous>, transform_indices = @transform_4, window_bounds = array<i64: 1, 256>}, {pipeline_mode = #tpu.pipeline_mode<synchronous>, transform_indices = @transform_5, window_bounds = array<i64: 256, 256>}, {pipeline_mode = #tpu.pipeline_mode<synchronous>, transform_indices = @transform_6, window_bounds = array<i64: 1, 256>}, {pipeline_mode = #tpu.pipeline_mode<synchronous>, transform_indices = @transform_7, window_bounds = array<i64: 256, 16>}, {pipeline_mode = #tpu.pipeline_mode<synchronous>, transform_indices = @transform_8, window_bounds = array<i64: 1, 16>}, {transform_indices = @transform_9, window_bounds = array<i64: 24, 16>}]} {
    %c0 = arith.constant 0 : index
    %c0_0 = arith.constant 0 : index
    %0 = vector.load %arg1[%c0, %c0_0] : memref<24x16xf32, #tpu.memory_space<vmem>>, vector<24x16xf32>
    %1 = arith.mulf %0, %0 : vector<24x16xf32>
    %2 = arith.truncf %1 : vector<24x16xf32> to vector<24x16xbf16>
    %c0_1 = arith.constant 0 : index
    %c0_2 = arith.constant 0 : index
    %3 = vector.load %arg2[%c0_1, %c0_2] : memref<16x128xbf16, #tpu.memory_space<vmem>>, vector<16x128xbf16>
    %cst = arith.constant dense<0.000000e+00> : vector<24x128xf32>
    %4 = tpu.matmul %2, %3, %cst {dimension_numbers = #tpu.dot_dimension_numbers<[1], [0], [0], [1], [0, 0, 1, 1], [], []>} : vector<24x16xbf16>, vector<16x128xbf16>, vector<24x128xf32> -> vector<24x128xf32>
    %c0_3 = arith.constant 0 : index
    %c0_4 = arith.constant 0 : index
    %5 = vector.load %arg3[%c0_3, %c0_4] : memref<1x128xf32, #tpu.memory_space<vmem>>, vector<1x128xf32>
    %6 = vector.broadcast %5 : vector<1x128xf32> to vector<24x128xf32>
    %7 = arith.addf %4, %6 : vector<24x128xf32>
    %8 = math.tanh %7 : vector<24x128xf32>
    %9 = arith.truncf %8 : vector<24x128xf32> to vector<24x128xbf16>
    %c0_5 = arith.constant 0 : index
    %c0_6 = arith.constant 0 : index
    %10 = vector.load %arg4[%c0_5, %c0_6] : memref<128x256xbf16, #tpu.memory_space<vmem>>, vector<128x256xbf16>
    %cst_7 = arith.constant dense<0.000000e+00> : vector<24x256xf32>
    %11 = tpu.matmul %9, %10, %cst_7 {dimension_numbers = #tpu.dot_dimension_numbers<[1], [0], [0], [1], [0, 0, 1, 1], [], []>} : vector<24x128xbf16>, vector<128x256xbf16>, vector<24x256xf32> -> vector<24x256xf32>
    %c0_8 = arith.constant 0 : index
    %c0_9 = arith.constant 0 : index
    %12 = vector.load %arg5[%c0_8, %c0_9] : memref<1x256xf32, #tpu.memory_space<vmem>>, vector<1x256xf32>
    %13 = vector.broadcast %12 : vector<1x256xf32> to vector<24x256xf32>
    %14 = arith.addf %11, %13 : vector<24x256xf32>
    %15 = math.tanh %14 : vector<24x256xf32>
    %16 = arith.truncf %15 : vector<24x256xf32> to vector<24x256xbf16>
    %c0_10 = arith.constant 0 : index
    %c0_11 = arith.constant 0 : index
    %17 = vector.load %arg6[%c0_10, %c0_11] : memref<256x256xbf16, #tpu.memory_space<vmem>>, vector<256x256xbf16>
    %cst_12 = arith.constant dense<0.000000e+00> : vector<24x256xf32>
    %18 = tpu.matmul %16, %17, %cst_12 {dimension_numbers = #tpu.dot_dimension_numbers<[1], [0], [0], [1], [0, 0, 1, 1], [], []>} : vector<24x256xbf16>, vector<256x256xbf16>, vector<24x256xf32> -> vector<24x256xf32>
    %c0_13 = arith.constant 0 : index
    %c0_14 = arith.constant 0 : index
    %19 = vector.load %arg7[%c0_13, %c0_14] : memref<1x256xf32, #tpu.memory_space<vmem>>, vector<1x256xf32>
    %20 = vector.broadcast %19 : vector<1x256xf32> to vector<24x256xf32>
    %21 = arith.addf %18, %20 : vector<24x256xf32>
    %22 = math.exp %21 : vector<24x256xf32>
    %c0_15 = arith.constant 0 : index
    %c0_16 = arith.constant 0 : index
    %23 = vector.load %arg8[%c0_15, %c0_16] : memref<256x16xf32, #tpu.memory_space<vmem>>, vector<256x16xf32>
    %cst_17 = arith.constant dense<0.000000e+00> : vector<24x16xf32>
    %24 = tpu.matmul %22, %23, %cst_17 {dimension_numbers = #tpu.dot_dimension_numbers<[1], [0], [0], [1], [0, 0, 1, 1], [], []>} : vector<24x256xf32>, vector<256x16xf32>, vector<24x16xf32> -> vector<24x16xf32>
    %c0_18 = arith.constant 0 : index
    %c0_19 = arith.constant 0 : index
    %25 = vector.load %arg9[%c0_18, %c0_19] : memref<1x16xf32, #tpu.memory_space<vmem>>, vector<1x16xf32>
    %26 = vector.broadcast %25 : vector<1x16xf32> to vector<24x16xf32>
    %27 = arith.addf %24, %26 : vector<24x16xf32>
    %c0_20 = arith.constant 0 : index
    %c0_21 = arith.constant 0 : index
    %28 = vector.load %arg10[%c0_20, %c0_21] : memref<24x16xf32, #tpu.memory_space<vmem>>, vector<24x16xf32>
    tpu.vector_store %arg10[%c0_20, %c0_21], %27 {strides = array<i32>} : memref<24x16xf32, #tpu.memory_space<vmem>>, vector<24x16xf32>,
    return
  }
  func.func @transform_0(%arg0: i32) -> (i32, i32) {
    %c0_i32 = arith.constant 0 : i32
    %c0_i32_0 = arith.constant 0 : i32
    return %arg0, %c0_i32 : i32, i32
  }
  func.func @transform_1(%arg0: i32) -> (i32, i32) {
    %c0_i32 = arith.constant 0 : i32
    %c0_i32_0 = arith.constant 0 : i32
    %c0_i32_1 = arith.constant 0 : i32
    return %c0_i32, %c0_i32_0 : i32, i32
  }
  func.func @transform_2(%arg0: i32) -> (i32, i32) {
    %c0_i32 = arith.constant 0 : i32
    %c0_i32_0 = arith.constant 0 : i32
    %c0_i32_1 = arith.constant 0 : i32
    return %c0_i32, %c0_i32_0 : i32, i32
  }
  func.func @transform_3(%arg0: i32) -> (i32, i32) {
    %c0_i32 = arith.constant 0 : i32
    %c0_i32_0 = arith.constant 0 : i32
    %c0_i32_1 = arith.constant 0 : i32
    return %c0_i32, %c0_i32_0 : i32, i32
  }
  func.func @transform_4(%arg0: i32) -> (i32, i32) {
    %c0_i32 = arith.constant 0 : i32
    %c0_i32_0 = arith.constant 0 : i32
    %c0_i32_1 = arith.constant 0 : i32
    return %c0_i32, %c0_i32_0 : i32, i32
  }
  func.func @transform_5(%arg0: i32) -> (i32, i32) {
    %c0_i32 = arith.constant 0 : i32
    %c0_i32_0 = arith.constant 0 : i32
    %c0_i32_1 = arith.constant 0 : i32
    return %c0_i32, %c0_i32_0 : i32, i32
  }
  func.func @transform_6(%arg0: i32) -> (i32, i32) {
    %c0_i32 = arith.constant 0 : i32
    %c0_i32_0 = arith.constant 0 : i32
    %c0_i32_1 = arith.constant 0 : i32
    return %c0_i32, %c0_i32_0 : i32, i32
  }
  func.func @transform_7(%arg0: i32) -> (i32, i32) {
    %c0_i32 = arith.constant 0 : i32
    %c0_i32_0 = arith.constant 0 : i32
    %c0_i32_1 = arith.constant 0 : i32
    return %c0_i32, %c0_i32_0 : i32, i32
  }
  func.func @transform_8(%arg0: i32) -> (i32, i32) {
    %c0_i32 = arith.constant 0 : i32
    %c0_i32_0 = arith.constant 0 : i32
    %c0_i32_1 = arith.constant 0 : i32
    return %c0_i32, %c0_i32_0 : i32, i32
  }
  func.func @transform_9(%arg0: i32) -> (i32, i32) {
    %c0_i32 = arith.constant 0 : i32
    %c0_i32_0 = arith.constant 0 : i32
    return %arg0, %c0_i32 : i32, i32
  }
}

</mosaic_0001>

<bundles_post_ra>
// kernel: tpu_custom_call.1
= control target key start
LH: loop header
LB: loop body
LE: loop exit
PB: predicated region body
PF: predicated region fallthrough
CT: control target
= control target key end

     0   :  { %14 = vsyncpa [#allocation3], 0  ;;  %s1392_s30 = smov 0   ;;  %s1663_s0 = inlined_call_operand.vmem [shape: f32[48,16], index: 0, kind: input, shape index: {}]   ;;  %s1664_s1 = inlined_call_operand.vmem [shape: bf16[16,128], index: 1, kind: input, shape index: {}]   ;;  %s1665_s2 = inlined_call_operand.vmem [shape: f32[1,128], index: 2, kind: input, shape index: {}]   ;;  %s1666_s3 = inlined_call_operand.hbm [shape: bf16[128,256], index: 3, kind: input, shape index: {}]   ;;  %s1667_s4 = inlined_call_operand.vmem [shape: f32[1,256], index: 4, kind: input, shape index: {}]   ;;  %s1668_s5 = inlined_call_operand.vmem [shape: bf16[256,256], index: 5, kind: input, shape index: {}]   ;;  %s1669_s6 = inlined_call_operand.vmem [shape: f32[1,256], index: 6, kind: input, shape index: {}]   ;;  %s1670_s7 = inlined_call_operand.vmem [shape: f32[256,16], index: 7, kind: input, shape index: {}]   ;;  %s1671_s8 = inlined_call_operand.vmem [shape: f32[1,16], index: 8, kind: input, shape index: {}]   ;;  %s1672_s9 = inlined_call_operand.vmem [shape: f32[48,16], index: 9, kind: output, shape index: {}]  }
   0x1 LB: > { %s1061_s10 = sadd.s32 4294967295, %s1336_s30   ;;  %p1063_p0 = scmp.ge.s32.totalorder %s1336_s30, 1  ;;  %s1336_s30 = sphi %s1392_s30, %s20_s30  }
   0x2   : > { %p245_p1 = scmp.lt.s32.totalorder %s1336_s30, 3  ;;  %s1338_s11 = smov [#allocation2]  }
   0x3   : > { %s263_s12 = sshll.u32 %s1338_s11, 4  ;;  %p1404_p3 = scmp.eq.s32.totalorder %s1061_s10, 0  ;;  %s264_s12 = int_to_ptr.vmem [resolvable:$true] %s263_s12 }
   0x4   : > { %p1400_p2 = pnand %p1063_p0, %p245_p1  ;;  %s1311_s15 = scalar_lea.vmem %s264_s12, 2048 }
   0x5   : > { %p1312_p7 = scmp.ne.s32.totalorder %s264_s12, %s1311_s15  ;;  %p1319_p10 = scmp.lt.s32.totalorder %s264_s12, %s264_s12 }
   0x6   : > { %p1179_p4 = pneg %p1400_p2  ;;  %p1320_p11 = scmp.lt.s32.totalorder %s1311_s15, %s1311_s15 }
   0x8   : > { %p1180_p5 = pnand %p1404_p3, %p1179_p4  ;;  %p1321_p12 = por %p1320_p11, %p1319_p10 }
   0xa   : > { %p1302_p6 = pneg %p1180_p5 }
   0xc   : > { %p1314_p8 = pnand %p1312_p7, %p1302_p6 }
   0xe   : > { %p1315_p9 = pneg %p1314_p8 }
  0x10   : > { %p1322_p13 = pnand %p1321_p12, %p1315_p9 }
  0x12   : > { %1325 = shalt.err (!%p1322_p13)
}
  0x13   : > { %s1339_s16 = smov 128   ;;  %s1340_s17 = smov 8  }
  0x14   : > { %1182 = dma.hbm_to_vmem [thread:$0]  (!%p1180_p5), %s1666_s3, 2048, %s264_s12, [#allocation3], %s1339_s16, %s1339_s16, %s1340_s17  }
  0x15   : > { %303 = sbr.rel (%p1400_p2) target bundleno = 897 (0x381), region = 56 }
  0x1a   : > { %1331 = dma.done.wait (%p1404_p3), [#allocation3], 2048  }
  0x1b   : > { %1333 = vsyncadd (%p1404_p3), [#allocation3], 4294965248  ;;  %s339_s20 = smul.u32 3, %s1061_s10  ;;  %v1197_v0 = vld [vmem:[%s1664_s1] sm:$0xff]   ;;  %vm375_vm0 = vcmask 130048   ;;  %v1341_v22 = vmov 0  }
  0x1c   : > { %1169 = vmatprep.subr.bf16.mxu1 %v1197_v0  ;;  %v1200_v7 = vld [vmem:[#allocation2 + $0x74] ss:$8 sps:$4 sm:$0xff]   ;;  %v1198_v10 = vld [vmem:[#allocation2 + $0x70] ss:$8 sps:$4 sm:$0xff]   ;;  %v1203_v11 = vld [vmem:[#allocation2 + $0x64] ss:$8 sps:$4 sm:$0xff]  }
  0x1d   : > { %p340_p0 = scmp.lt.s32.totalorder %s339_s20, 5  ;;  %1170 = vmatpush3.bf16.msra.mxu1 %v1197_v0  ;;  %v1201_v12 = vld [vmem:[#allocation2 + $0x60] ss:$8 sps:$4 sm:$0xff]   ;;  %v1206_v13 = vld [vmem:[#allocation2 + $0x54] ss:$8 sps:$4 sm:$0xff]  }
  0x1e   : > { %543 = vmatprep.subr.bf16.mxu1 %v1200_v7  ;;  %v1204_v14 = vld [vmem:[#allocation2 + $0x50] ss:$8 sps:$4 sm:$0xff]   ;;  %v1209_v15 = vld [vmem:[#allocation2 + $0x44] ss:$8 sps:$4 sm:$0xff]   ;;  %v1207_v16 = vld [vmem:[#allocation2 + $0x40] ss:$8 sps:$4 sm:$0xff]  }
  0x1f   : > { %s1676_s20 = smov (!%p340_p0, %s339_s20), 5  ;;  %v1212_v17 = vld [vmem:[#allocation2 + $0x34] ss:$8 sps:$4 sm:$0xff]   ;;  %v1210_v18 = vld [vmem:[#allocation2 + $0x30] ss:$8 sps:$4 sm:$0xff]  }
  0x20   : > { %s1068_s21 = sshll.u32 %s1676_s20, 3  ;;  %v1215_v19 = vld [vmem:[#allocation2 + $0x24] ss:$8 sps:$4 sm:$0xff]   ;;  %v1213_v20 = vld [vmem:[#allocation2 + $0x20] ss:$8 sps:$4 sm:$0xff]   ;;  %v902_v7 = vld [vmem:[%s1670_s7 + $0xf8] sm:$0xff] }
  0x21   : > { %s343_s26 = scalar_lea.vmem %s1663_s0, %s1068_s21  ;;  %v1218_v21 = vld [vmem:[#allocation2 + $0x14] ss:$8 sps:$4 sm:$0xff]   ;;  %v1216_v23 = vld [vmem:[#allocation2 + $0x10] ss:$8 sps:$4 sm:$0xff]   ;;  %v1221_v24 = vld [vmem:[#allocation2 + $0x4] ss:$8 sps:$4 sm:$0xff]   ;;  %s349_s19 = scalar_lea.vmem %s1672_s9, %s1068_s21 }
  0x22   : > { %v352_v1 = vld [vmem:[%s343_s26] sm:$0xff]  ;;  %v353_v2 = vld [vmem:[%s343_s26 + $0x8] sm:$0xff]  ;;  %v354_v3 = vld [vmem:[%s343_s26 + $0x10] sm:$0xff] }
  0x23   : > { %v355_v4 = vmul.f32 %v352_v1, %v352_v1  ;;  %v356_v5 = vmul.f32 %v353_v2, %v353_v2  ;;  %v357_v6 = vmul.f32 %v354_v3, %v354_v3  ;;  %v1219_v25 = vld [vmem:[#allocation2] ss:$8 sps:$4 sm:$0xff]   ;;  %v1222_v26 = vld [vmem:[%s1668_s5 + $0x74] ss:$8 sps:$4 sm:$0xff]   ;;  %v1224_v27 = vld [vmem:[%s1668_s5 + $0x70] ss:$8 sps:$4 sm:$0xff]  }
  0x24   : > { %v1225_v28 = vld [vmem:[%s1668_s5 + $0x64] ss:$8 sps:$4 sm:$0xff]   ;;  %808 = vmatprep.subr.bf16.mxu0 %v1222_v26  ;;  %v1227_v29 = vld [vmem:[%s1668_s5 + $0x60] ss:$8 sps:$4 sm:$0xff]   ;;  %v1228_v30 = vld [vmem:[%s1668_s5 + $0x54] ss:$8 sps:$4 sm:$0xff]  }
  0x25   : > { %v358_v8 = vpack.c.bf16 %v356_v5, %v355_v4  ;;  %v359_v9 = vpack.c.bf16 %v357_v6, %v357_v6  ;;  %809 = vmatpush1.bf16.msra.mxu0 %v1224_v27  ;;  %v1230_v31 = vld [vmem:[%s1668_s5 + $0x50] ss:$8 sps:$4 sm:$0xff]   ;;  %v1231_v32 = vld [vmem:[%s1668_s5 + $0x44] ss:$8 sps:$4 sm:$0xff]   ;;  %v1233_v33 = vld [vmem:[%s1668_s5 + $0x40] ss:$8 sps:$4 sm:$0xff]  }
  0x26   : > { %810 = vmatprep.subr.bf16.mxu0 %v1225_v28  ;;  %v1234_v34 = vld [vmem:[%s1668_s5 + $0x34] ss:$8 sps:$4 sm:$0xff]   ;;  %v1236_v35 = vld [vmem:[%s1668_s5 + $0x30] ss:$8 sps:$4 sm:$0xff]   ;;  %v1237_v36 = vld [vmem:[%s1668_s5 + $0x24] ss:$8 sps:$4 sm:$0xff]  }
  0x27   : > { %1171 = vmatprep.mubr.msk.bf16.mxu1 %vm375_vm0, %v358_v8  ;;  %v1239_v37 = vld [vmem:[%s1668_s5 + $0x20] ss:$8 sps:$4 sm:$0xff]   ;;  %v1240_v38 = vld [vmem:[%s1668_s5 + $0x14] ss:$8 sps:$4 sm:$0xff]   ;;  %v1242_v39 = vld [vmem:[%s1668_s5 + $0x10] ss:$8 sps:$4 sm:$0xff]  }
  0x28   : > { %1172 = vmatmul.mubr.msk.bf16.vlgmr.msra.gmra.mxu1 %vm375_vm0, %v359_v9  ;;  %v1243_v40 = vld [vmem:[%s1668_s5 + $0x4] ss:$8 sps:$4 sm:$0xff]   ;;  %v1245_v41 = vld [vmem:[%s1668_s5] ss:$8 sps:$4 sm:$0xff]   ;;  %v1246_v42 = vld [vmem:[%s1668_s5 + $0xf4] ss:$8 sps:$4 sm:$0xff]  }
  0x29   : > { %544 = vmatpush1.bf16.msra.mxu1 %v1198_v10  ;;  %575 = vmatprep.mubr.bf16.mxu1 %v1341_v22  ;;  %v1248_v43 = vld [vmem:[%s1668_s5 + $0xf0] ss:$8 sps:$4 sm:$0xff]   ;;  %v1249_v44 = vld [vmem:[%s1668_s5 + $0xe4] ss:$8 sps:$4 sm:$0xff]   ;;  %v1251_v45 = vld [vmem:[%s1668_s5 + $0xe0] ss:$8 sps:$4 sm:$0xff]  }
  0x2a   : > { %545 = vmatprep.subr.bf16.mxu1 %v1203_v11  ;;  %811 = vmatpush1.bf16.msra.mxu0 %v1227_v29  ;;  %v1070_v48 = vld [vmem:[%s1665_s2] ss:$0 sm:$0xff]  ;;  %v1252_v59 = vld [vmem:[%s1668_s5 + $0xd4] ss:$8 sps:$4 sm:$0xff]   ;;  %v1254_v60 = vld [vmem:[%s1668_s5 + $0xd0] ss:$8 sps:$4 sm:$0xff]  }
  0x2b   : > { %812 = vmatprep.subr.bf16.mxu0 %v1228_v30  ;;  %v1255_v61 = vld [vmem:[%s1668_s5 + $0xc4] ss:$8 sps:$4 sm:$0xff]   ;;  %v1257_v62 = vld [vmem:[%s1668_s5 + $0xc0] ss:$8 sps:$4 sm:$0xff]   ;;  %v1258_v63 = vld [vmem:[%s1668_s5 + $0xb4] ss:$8 sps:$4 sm:$0xff]  }
  0x2c   : > { %v1260_v0 = vld [vmem:[%s1668_s5 + $0xb0] ss:$8 sps:$4 sm:$0xff]   ;;  %v1261_v1 = vld [vmem:[%s1668_s5 + $0xa4] ss:$8 sps:$4 sm:$0xff]   ;;  %v1263_v2 = vld [vmem:[%s1668_s5 + $0xa0] ss:$8 sps:$4 sm:$0xff]  }
  0x2d   : > { %546 = vmatpush1.bf16.msra.mxu1 %v1201_v12  ;;  %v1264_v3 = vld [vmem:[%s1668_s5 + $0x94] ss:$8 sps:$4 sm:$0xff]   ;;  %v1266_v4 = vld [vmem:[%s1668_s5 + $0x90] ss:$8 sps:$4 sm:$0xff]   ;;  %v1267_v5 = vld [vmem:[%s1668_s5 + $0x84] ss:$8 sps:$4 sm:$0xff]  }
  0x2e   : > { %547 = vmatprep.subr.bf16.mxu1 %v1206_v13  ;;  %813 = vmatpush1.bf16.msra.mxu0 %v1230_v31  ;;  %v1269_v6 = vld [vmem:[%s1668_s5 + $0x80] ss:$8 sps:$4 sm:$0xff]   ;;  %v886_v8 = vld [vmem:[%s1670_s7 + $0x78] sm:$0xff]  ;;  %v901_v9 = vld [vmem:[%s1670_s7 + $0xf0] sm:$0xff] }
  0x2f   : > { %814 = vmatprep.subr.bf16.mxu0 %v1231_v32  ;;  %v885_v10 = vld [vmem:[%s1670_s7 + $0x70] sm:$0xff]  ;;  %v900_v11 = vld [vmem:[%s1670_s7 + $0xe8] sm:$0xff]  ;;  %v899_v13 = vld [vmem:[%s1670_s7 + $0xe0] sm:$0xff] }
  0x30   : > { %v884_v12 = vld [vmem:[%s1670_s7 + $0x68] sm:$0xff] }
  0x31   : > { %548 = vmatpush1.bf16.msra.mxu1 %v1204_v14  ;;  %v883_v14 = vld [vmem:[%s1670_s7 + $0x60] sm:$0xff] }
  0x32   : > { %549 = vmatprep.subr.bf16.mxu1 %v1209_v15  ;;  %815 = vmatpush1.bf16.msra.mxu0 %v1233_v33  ;;  %v898_v15 = vld [vmem:[%s1670_s7 + $0xd8] sm:$0xff] }
  0x33   : > { %816 = vmatprep.subr.bf16.mxu0 %v1234_v34 }
  0x35   : > { %550 = vmatpush1.bf16.msra.mxu1 %v1207_v16  ;;  %v882_v16 = vld [vmem:[%s1670_s7 + $0x58] sm:$0xff] }
  0x36   : > { %551 = vmatprep.subr.bf16.mxu1 %v1212_v17  ;;  %817 = vmatpush1.bf16.msra.mxu0 %v1236_v35  ;;  %v453_v17 = vlaneseq }
  0x37   : > { %818 = vmatprep.subr.bf16.mxu0 %v1237_v36 }
  0x39   : > { %552 = vmatpush1.bf16.msra.mxu1 %v1210_v18  ;;  %v1565_v18 = vshrl.u32 %v453_v17, 7 }
  0x3a   : > { %553 = vmatprep.subr.bf16.mxu1 %v1215_v19  ;;  %819 = vmatpush1.bf16.msra.mxu0 %v1239_v37 }
  0x3b   : > { %820 = vmatprep.subr.bf16.mxu0 %v1240_v38  ;;  %v459_v19 = vsub.s32 1, %v1565_v18 }
  0x3d   : > { %554 = vmatpush1.bf16.msra.mxu1 %v1213_v20  ;;  %v451_v20 = vld [vmem:[%s1667_s4] sm:$0x3] }
  0x3e   : > { %555 = vmatprep.subr.bf16.mxu1 %v1218_v21  ;;  %821 = vmatpush1.bf16.msra.mxu0 %v1242_v39  ;;  %v455_v21 = vsub.s32 0, %v1565_v18 }
  0x3f   : > { %822 = vmatprep.subr.bf16.mxu0 %v1243_v40 }
  0x41   : > { %556 = vmatpush1.bf16.msra.mxu1 %v1216_v23 }
  0x42   : > { %557 = vmatprep.subr.bf16.mxu1 %v1221_v24  ;;  %823 = vmatpush1.bf16.msra.mxu0 %v1245_v41  ;;  %v456_v24 = vrot.slane %v451_v20, %v455_v21 }
  0x43   : > { %824 = vmatprep.subr.bf16.mxu0 %v1246_v42 }
  0x45   : > { %558 = vmatpush1.bf16.msra.mxu1 %v1219_v25 }
  0x46   : > { %825 = vmatpush2.bf16.msra.mxu0 %v1248_v43  ;;  %1128 = vmatprep.subr.mxu1 %v902_v7 }
  0x47   : > { %826 = vmatprep.subr.bf16.mxu0 %v1249_v44 }
  0x4a   : > { %827 = vmatpush2.bf16.msra.mxu0 %v1251_v45 }
  0x4b   : > { %828 = vmatprep.subr.bf16.mxu0 %v1252_v59  ;;  %v876_v59 = vld [vmem:[%s1670_s7 + $0x28] sm:$0xff] }
  0x4e   : > { %829 = vmatpush2.bf16.msra.mxu0 %v1254_v60  ;;  %v891_v60 = vld [vmem:[%s1670_s7 + $0xa0] sm:$0xff] }
  0x4f   : > { %830 = vmatprep.subr.bf16.mxu0 %v1255_v61  ;;  %v875_v61 = vld [vmem:[%s1670_s7 + $0x20] sm:$0xff] }
  0x52   : > { %831 = vmatpush2.bf16.msra.mxu0 %v1257_v62  ;;  %v890_v62 = vld [vmem:[%s1670_s7 + $0x98] sm:$0xff] }
  0x53   : > { %832 = vmatprep.subr.bf16.mxu0 %v1258_v63  ;;  %v874_v63 = vld [vmem:[%s1670_s7 + $0x18] sm:$0xff] }
  0x56   : > { %833 = vmatpush2.bf16.msra.mxu0 %v1260_v0  ;;  %v889_v0 = vld [vmem:[%s1670_s7 + $0x90] sm:$0xff] }
  0x57   : > { %834 = vmatprep.subr.bf16.mxu0 %v1261_v1  ;;  %v873_v1 = vld [vmem:[%s1670_s7 + $0x10] sm:$0xff] }
  0x5a   : > { %835 = vmatpush2.bf16.msra.mxu0 %v1263_v2  ;;  %v888_v2 = vld [vmem:[%s1670_s7 + $0x88] sm:$0xff] }
  0x5b   : > { %836 = vmatprep.subr.bf16.mxu0 %v1264_v3  ;;  %v872_v3 = vld [vmem:[%s1670_s7 + $0x8] sm:$0xff] }
  0x5e   : > { %837 = vmatpush2.bf16.msra.mxu0 %v1266_v4  ;;  %v887_v4 = vld [vmem:[%s1670_s7 + $0x80] sm:$0xff] }
  0x5f   : > { %838 = vmatprep.subr.bf16.mxu0 %v1267_v5  ;;  %v871_v5 = vld [vmem:[%s1670_s7] sm:$0xff] }
  0x62   : > { %839 = vmatpush2.bf16.msra.mxu0 %v1269_v6  ;;  %v636_v6 = vld [vmem:[%s1669_s6] sm:$0x3] }
  0x63   : > { %v641_v7 = vrot.slane %v636_v6, %v455_v21 }
  0xe8   : > { %v1173_v46 = vpop.f32.mrf.mxu1 }
  0xe9   : > { %v425_v53 = vadd.f32 %v1173_v46, %v1070_v48 }
  0xea   : > { %v416_v47 = vpop.f32.mrf.mxu1 }
  0xeb   : > { %v417_v49 = vadd.f32 %v1070_v48, %v416_v47 }
  0xec   : > { %v1174_v50 = vpop.f32.mrf.mxu1 }
  0xed   : > { %1270 = vtanh.f32 %v417_v49  ;;  %v881_v49 = vld [vmem:[%s1670_s7 + $0x50] sm:$0xff]  ;;  %v896_v50 = vld [vmem:[%s1670_s7 + $0xc8] sm:$0xff] }
  0xee   : > { %v419_v51 = vpop.f32.mrf.mxu1 }
  0xef   : > { %v420_v52 = vadd.f32 %v1070_v48, %v419_v51  ;;  %v897_v48 = vld [vmem:[%s1670_s7 + $0xd0] sm:$0xff]  ;;  %v880_v51 = vld [vmem:[%s1670_s7 + $0x48] sm:$0xff] }
  0xf1   : > { %1272 = vtanh.f32 %v420_v52  ;;  %v895_v52 = vld [vmem:[%s1670_s7 + $0xc0] sm:$0xff] }
  0xf2   : > { %1274 = vtanh.f32 %v425_v53  ;;  %v879_v53 = vld [vmem:[%s1670_s7 + $0x40] sm:$0xff] }
  0xfa   : > { %v1271_v54 = vpop.eup %1270 }
  0xfe   : > { %v1273_v55 = vpop.eup %1272 }
  0xff   : > { %v433_v56 = vpack.c.bf16 %v1273_v55, %v1271_v54  ;;  %v1275_v57 = vpop.eup %1274  ;;  %v894_v54 = vld [vmem:[%s1670_s7 + $0xb8] sm:$0xff] }
 0x100   : > { %v434_v58 = vpack.c.bf16 %v1275_v57, %v1275_v57  ;;  %v878_v55 = vld [vmem:[%s1670_s7 + $0x38] sm:$0xff]  ;;  %v877_v57 = vld [vmem:[%s1670_s7 + $0x30] sm:$0xff] }
 0x101   : > { %576 = vmatmul.mubr.bf16.vlgmr.msra.gmra.mxu1 %v433_v56  ;;  %v893_v56 = vld [vmem:[%s1670_s7 + $0xb0] sm:$0xff] }
 0x102   : > { %585 = vmatprep.mubr.bf16.mxu1 %v1341_v22  ;;  %1129 = vmatpush3.msra.mxu1 %v886_v8  ;;  %v460_v22 = vrot.slane %v451_v20, %v459_v19  ;;  %v645_v8 = vrot.slane %v636_v6, %v459_v19 }
 0x103   : > { %1130 = vmatprep.subr.mxu1 %v901_v9 }
 0x104   : > { %1131 = vmatpush3.msra.mxu1 %v885_v10 }
 0x105   : > { %1132 = vmatprep.subr.mxu1 %v900_v11 }
 0x106   : > { %1133 = vmatpush3.msra.mxu1 %v884_v12 }
 0x107   : > { %1134 = vmatprep.subr.mxu1 %v899_v13 }
 0x108   : > { %1135 = vmatpush3.msra.mxu1 %v883_v14 }
 0x109   : > { %586 = vmatmul.mubr.bf16.gmra.mxu1 %v434_v58  ;;  %1136 = vmatprep.subr.mxu1 %v898_v15  ;;  %v892_v58 = vld [vmem:[%s1670_s7 + $0xa8] sm:$0xff] }
 0x10a   : > { %1137 = vmatpush3.msra.mxu1 %v882_v16 }
 0x10b   : > { %1138 = vmatprep.subr.mxu1 %v897_v48 }
 0x10c   : > { %1139 = vmatpush3.msra.mxu1 %v881_v49 }
 0x10d   : > { %1140 = vmatprep.subr.mxu1 %v896_v50 }
 0x10e   : > { %1141 = vmatpush3.msra.mxu1 %v880_v51 }
 0x10f   : > { %1142 = vmatprep.subr.mxu1 %v895_v52 }
 0x110   : > { %1143 = vmatpush3.msra.mxu1 %v879_v53 }
 0x111   : > { %1144 = vmatprep.subr.mxu1 %v894_v54 }
 0x112   : > { %1145 = vmatpush3.msra.mxu1 %v878_v55 }
 0x113   : > { %1146 = vmatprep.subr.mxu1 %v893_v56 }
 0x114   : > { %1147 = vmatpush3.msra.mxu1 %v877_v57 }
 0x115   : > { %1148 = vmatprep.subr.mxu1 %v892_v58 }
 0x116   : > { %1149 = vmatpush3.msra.mxu1 %v876_v59 }
 0x117   : > { %1150 = vmatprep.subr.mxu1 %v891_v60 }
 0x118   : > { %1151 = vmatpush3.msra.mxu1 %v875_v61 }
 0x119   : > { %1152 = vmatprep.subr.mxu1 %v890_v62 }
 0x11a   : > { %1153 = vmatpush3.msra.mxu1 %v874_v63 }
 0x11b   : > { %1154 = vmatprep.subr.mxu1 %v889_v0 }
 0x11c   : > { %1155 = vmatpush3.msra.mxu1 %v873_v1 }
 0x11d   : > { %1156 = vmatprep.subr.mxu1 %v888_v2 }
 0x11e   : > { %1157 = vmatpush3.msra.mxu1 %v872_v3 }
 0x11f   : > { %1158 = vmatprep.subr.mxu1 %v887_v4 }
 0x120   : > { %1159 = vmatpush3.msra.mxu1 %v871_v5 }
 0x1c1   : > { %v577_v23 = vpop.f32.mrf.mxu1 }
 0x1c2   : > { %v578_v29 = vadd.f32 %v577_v23, %v456_v24 }
 0x1c3   : > { %v579_v25 = vpop.f32.mrf.mxu1 }
 0x1c4   : > { %v580_v26 = vadd.f32 %v579_v25, %v460_v22 }
 0x1c5   : > { %v581_v27 = vpop.f32.mrf.mxu1 }
 0x1c6   : > { %v582_v28 = vadd.f32 %v581_v27, %v456_v24  ;;  %1276 = vtanh.f32 %v580_v26 }
 0x1c7   : > { %v583_v30 = vpop.f32.mrf.mxu1 }
 0x1c8   : > { %v584_v31 = vadd.f32 %v583_v30, %v460_v22  ;;  %1278 = vtanh.f32 %v582_v28 }
 0x1c9   : > { %v587_v32 = vpop.f32.mrf.mxu1 }
 0x1ca   : > { %1280 = vtanh.f32 %v584_v31  ;;  %v588_v35 = vadd.f32 %v587_v32, %v456_v24 }
 0x1cb   : > { %1282 = vtanh.f32 %v578_v29  ;;  %v589_v33 = vpop.f32.mrf.mxu1 }
 0x1cc   : > { %v590_v34 = vadd.f32 %v589_v33, %v460_v22 }
 0x1cd   : > { %v591_v36 = vpop.f32.mrf.mxu1 }
 0x1ce   : > { %1284 = vtanh.f32 %v590_v34  ;;  %v1122_v36 = vld [vmem:[%s1671_s8] ss:$0 sm:$0xff] }
 0x1cf   : > { %v592_v37 = vpop.f32.mrf.mxu1  ;;  %1286 = vtanh.f32 %v588_v35 }
 0x1d3   : > { %v1277_v38 = vpop.eup %1276 }
 0x1d5   : > { %v1279_v39 = vpop.eup %1278 }
 0x1d7   : > { %v1281_v40 = vpop.eup %1280 }
 0x1d8   : > { %v1283_v41 = vpop.eup %1282  ;;  %v601_v42 = vpack.c.bf16 %v1281_v40, %v1277_v38 }
 0x1d9   : > { %v600_v43 = vpack.c.bf16 %v1279_v39, %v1283_v41 }
 0x1da   : > { %840 = vmatprep.mubr.bf16.mxu0 %v601_v42 }
 0x1db   : > { %v1285_v44 = vpop.eup %1284  ;;  %841 = vmatmul.mubr.bf16.vlgmr.msra.gmra.mxu0 %v600_v43 }
 0x1dc   : > { %v603_v45 = vpack.c.bf16 %v1285_v44, %v1285_v44  ;;  %v1287_v46 = vpop.eup %1286 }
 0x1dd   : > { %v602_v47 = vpack.c.bf16 %v1287_v46, %v1287_v46 }
 0x1de   : > { %850 = vmatprep.mubr.bf16.mxu0 %v603_v45 }
 0x1e3   : > { %851 = vmatmul.mubr.bf16.gmra.mxu0 %v602_v47 }
 0x29b   : > { %v842_v9 = vpop.f32.mrf.mxu0 }
 0x29c   : > { %v843_v10 = vadd.f32 %v842_v9, %v641_v7 }
 0x29d   : > { %v844_v11 = vpop.f32.mrf.mxu0 }
 0x29e   : > { %v845_v12 = vadd.f32 %v844_v11, %v645_v8  ;;  %v859_v13 = vmul.f32 1.442695, %v843_v10 }
 0x29f   : > { %v846_v14 = vpop.f32.mrf.mxu0 }
 0x2a0   : > { %v861_v15 = vmul.f32 1.442695, %v845_v12  ;;  %v847_v16 = vadd.f32 %v846_v14, %v641_v7 }
 0x2a1   : > { %v848_v17 = vpop.f32.mrf.mxu0 }
 0x2a2   : > { %1288 = vpow2.f32 %v861_v15  ;;  %v849_v20 = vadd.f32 %v848_v17, %v645_v8  ;;  %v863_v22 = vmul.f32 1.442695, %v847_v16 }
 0x2a3   : > { %1290 = vpow2.f32 %v859_v13  ;;  %v852_v23 = vpop.f32.mrf.mxu0 }
 0x2a4   : > { %v865_v24 = vmul.f32 1.442695, %v849_v20  ;;  %v853_v25 = vadd.f32 %v852_v23, %v641_v7 }
 0x2a5   : > { %v854_v21 = vpop.f32.mrf.mxu0 }
 0x2a6   : > { %1292 = vpow2.f32 %v865_v24  ;;  %v855_v18 = vadd.f32 %v854_v21, %v645_v8  ;;  %v867_v19 = vmul.f32 1.442695, %v853_v25 }
 0x2a7   : > { %1294 = vpow2.f32 %v863_v22  ;;  %v856_v26 = vpop.f32.mrf.mxu0 }
 0x2a8   : > { %v869_v27 = vmul.f32 1.442695, %v855_v18 }
 0x2a9   : > { %v857_v28 = vpop.f32.mrf.mxu0 }
 0x2aa   : > { %1296 = vpow2.f32 %v869_v27 }
 0x2ab   : > { %1298 = vpow2.f32 %v867_v19 }
 0x2af   : > { %v1289_v29 = vpop.eup %1288 }
 0x2b0   : > { %v1291_v30 = vpop.eup %1290  ;;  %974 = vmatprep.mubr.f32.mxu1 %v1289_v29 }
 0x2b1   : > { %975 = vmatmul.mubr.f32.vlgmr.msra.gmra.mxu1 %v1291_v30 }
 0x2b3   : > { %v1293_v31 = vpop.eup %1292 }
 0x2b4   : > { %v1295_v32 = vpop.eup %1294  ;;  %979 = vmatprep.mubr.f32.mxu1 %v1293_v31 }
 0x2b5   : > { %980 = vmatmul.mubr.f32.gmra.mxu1 %v1295_v32 }
 0x2b7   : > { %v1297_v33 = vpop.eup %1296 }
 0x2b8   : > { %v1299_v34 = vpop.eup %1298  ;;  %984 = vmatprep.mubr.f32.mxu1 %v1297_v33 }
 0x2b9   : > { %985 = vmatmul.mubr.f32.gmra.mxu1 %v1299_v34 }
 0x371   : > { %v1160_v35 = vpop.f32.mrf.mxu1 }
 0x373   : > { %v1161_v37 = vpop.f32.mrf.mxu1 }
 0x374   : > { %v1162_v38 = vadd.f32 %v1161_v37, %v1160_v35 }
 0x375   : > { %v1163_v39 = vpop.f32.mrf.mxu1 }
 0x376   : > { %v977_v40 = vadd.f32 %v1162_v38, %v1122_v36 }
 0x377   : > { %v1164_v41 = vpop.f32.mrf.mxu1 }
 0x378   : > { %990 = vst.msk [vmem:[%s349_s19] sm:$0xff] %vm375_vm0, %v977_v40  ;;  %v1165_v42 = vadd.f32 %v1164_v41, %v1163_v39 }
 0x379   : > { %v1166_v43 = vpop.f32.mrf.mxu1 }
 0x37a   : > { %v982_v44 = vadd.f32 %v1165_v42, %v1122_v36 }
 0x37b   : > { %v1167_v45 = vpop.f32.mrf.mxu1 }
 0x37c   : > { %991 = vst.msk [vmem:[%s349_s19 + $0x8] sm:$0xff] %vm375_vm0, %v982_v44  ;;  %v1168_v46 = vadd.f32 %v1167_v45, %v1166_v43 }
 0x37e   : > { %v987_v47 = vadd.f32 %v1168_v46, %v1122_v36 }
 0x380   : > { %992 = vst.msk [vmem:[%s349_s19 + $0x10] sm:$0xff] %vm375_vm0, %v987_v47 }
 0x381 PF: > { %s20_s30 = sadd.s32 1, %s1336_s30  }
 0x382   : > { %p17_p1 = scmp.ge.s32.totalorder %s20_s30, 4  }
 0x384   :  { %19 = sbr.rel (!%p17_p1) target bundleno = 1 (0x1), region = 91 }
 0x389   :  { %1015 = vsyncpa [#allocation3], 1 }
 0x38a   :  { %1017 = vsyncpa [#allocation3 + $0x1], 1 }

</bundles_post_ra>
